<compile_context>
chip_gen: v7x
topology: tpu7x:2x2x1
jax: 0.10.0
libtpu: 0.0.40
codegen_flags: <defaults>
</compile_context>

<pallas_src>
import functools

import jax
import jax.numpy as jnp
from jax.experimental import pallas as pl
from jax.experimental.pallas import tpu as pltpu

_LANES = 128
_MAX_SINGLE_ROWS = 8192   # <= 4 MiB/operand f32 -> single-block, grid-less path
_TILE_ROWS = 2048         # streaming-path tile height (1 MiB f32 per operand block)
_NUM_SPLITS = 2           # shard the stream over 2 TensorCores on v7x; serial elsewhere


def _small_kernel(pred_ref, ref_ref, out_ref):
    """Whole problem in one VMEM block; emit the scalar directly to SMEM."""
    p = pred_ref[...].astype(jnp.float32)
    r = ref_ref[...].astype(jnp.float32)
    sum_abs = jnp.sum(jnp.abs(p - r))
    sum_ps = jnp.sum(p + r)
    # Division by sum(p+r)==0 yields inf/NaN exactly like the PyTorch original.
    out_ref[0, 0] = jnp.maximum(jnp.float32(0.0),
                                jnp.float32(0.2) - 2.0 * sum_abs / sum_ps)


def _tiled_kernel(pred_ref, ref_ref, out_abs_ref, out_ps_ref, *,
                  blocks_per_core, valid_rows, ragged):
    """Streaming reduction into resident (1,8,128) per-core output accumulators."""
    c = pl.program_id(0)   # parallel axis (TensorCore shard)
    i = pl.program_id(1)   # arbitrary axis (serial block stream per core)

    @pl.when(i == 0)
    def _():
        out_abs_ref[...] = jnp.zeros_like(out_abs_ref)
        out_ps_ref[...] = jnp.zeros_like(out_ps_ref)

    p = pred_ref[...].astype(jnp.float32)
    r = ref_ref[...].astype(jnp.float32)

    if ragged:  # static: only emitted when the grid over-covers the slab
        start = (c * blocks_per_core + i) * _TILE_ROWS
        row = start + jax.lax.broadcasted_iota(jnp.int32, p.shape, 0)
        valid = row < valid_rows
        zero = jnp.float32(0.0)
        p = jnp.where(valid, p, zero)
        r = jnp.where(valid, r, zero)

    # Reduce the (TILE_ROWS, 128) tile over its leading axis down to one vreg
    # per sum (cheap VPU adds, hidden under the 1 MiB block DMA), then issue a
    # single vreg-sized accumulate into the resident output block.
    part_abs = jnp.sum(jnp.abs(p - r).reshape(-1, 8, _LANES), axis=0)
    part_ps = jnp.sum((p + r).reshape(-1, 8, _LANES), axis=0)
    out_abs_ref[...] += part_abs[None]
    out_ps_ref[...] += part_ps[None]


def _to_slab(x, row_multiple):
    """Flatten to a lane-dense (rows, 128) slab in the native dtype.

    Only pads to `row_multiple` rows (a few KiB at most); zero padding applied
    identically to both operands cancels in both sums, so the folded loss is
    unaffected.
    """
    flat = x.reshape(-1)
    n = flat.size
    rows = -(-n // _LANES)
    rows = -(-rows // row_multiple) * row_multiple
    padded = rows * _LANES
    if padded != n:
        flat = jnp.pad(flat, (0, padded - n))
    return flat.reshape(rows, _LANES)


@jax.jit
def diversity_loss(pred, ref):
    """Computes max(0, 0.2 - L1(pred, ref)*2 / mean(pred+ref)) as a scalar."""
    assert pred.shape == ref.shape
    # Keep narrow float dtypes (bf16/f16) native in HBM; everything else -> f32.
    ctype = jnp.promote_types(pred.dtype, ref.dtype)
    if not (jnp.issubdtype(ctype, jnp.floating) and jnp.dtype(ctype).itemsize <= 4):
        ctype = jnp.dtype(jnp.float32)
    pred = pred.astype(ctype)
    ref = ref.astype(ctype)
    row_mult = 8 * max(1, 4 // jnp.dtype(ctype).itemsize)   # f32:8, bf16:16, 1B:32

    n = pred.size
    rows_raw = -(-n // _LANES)

    if rows_raw <= _MAX_SINGLE_ROWS:
        # Single block, no grid, no accumulators: one big contiguous DMA per operand.
        pred2d = _to_slab(pred, row_mult)
        ref2d = _to_slab(ref, row_mult)
        out = pl.pallas_call(
            _small_kernel,
            out_shape=jax.ShapeDtypeStruct((1, 1), jnp.float32),
            in_specs=[
                pl.BlockSpec(memory_space=pltpu.MemorySpace.VMEM),
                pl.BlockSpec(memory_space=pltpu.MemorySpace.VMEM),
            ],
            out_specs=pl.BlockSpec(memory_space=pltpu.MemorySpace.SMEM),
        )(pred2d, ref2d)
        return out[0, 0]

    # Large-input streaming path: 1 MiB lane-dense blocks, default double
    # buffering, row range split over _NUM_SPLITS parallel grid entries
    # (sharded across TensorCores on v7x).
    pred2d = _to_slab(pred, row_mult)
    ref2d = _to_slab(ref, row_mult)
    rows = pred2d.shape[0]
    blocks = -(-rows // _TILE_ROWS)
    bpc = -(-blocks // _NUM_SPLITS)                     # blocks per core
    ragged = (bpc * _NUM_SPLITS * _TILE_ROWS) != rows   # grid over-covers the slab
    last_block = blocks - 1

    def in_map(c, i):
        b = c * bpc + i
        # Clamp so every block DMA starts in bounds; the in-kernel row mask
        # zeroes any contribution from re-read / partially-valid tail blocks.
        return (jnp.minimum(b, last_block), 0)

    kernel = functools.partial(_tiled_kernel, blocks_per_core=bpc,
                               valid_rows=rows, ragged=ragged)

    out_abs, out_ps = pl.pallas_call(
        kernel,
        out_shape=(jax.ShapeDtypeStruct((_NUM_SPLITS, 8, _LANES), jnp.float32),
                   jax.ShapeDtypeStruct((_NUM_SPLITS, 8, _LANES), jnp.float32)),
        grid_spec=pltpu.PrefetchScalarGridSpec(
            num_scalar_prefetch=0,
            grid=(_NUM_SPLITS, bpc),
            in_specs=[
                pl.BlockSpec((_TILE_ROWS, _LANES), in_map),
                pl.BlockSpec((_TILE_ROWS, _LANES), in_map),
            ],
            out_specs=(
                pl.BlockSpec((1, 8, _LANES), lambda c, i: (c, 0, 0)),
                pl.BlockSpec((1, 8, _LANES), lambda c, i: (c, 0, 0)),
            ),
        ),
        compiler_params=pltpu.CompilerParams(
            dimension_semantics=("parallel", "arbitrary"),
        ),
    )(pred2d, ref2d)

    # Tiny cross-core combine + relu in the wrapper (a few KiB of f32).
    sum_abs = jnp.sum(out_abs)
    sum_ps = jnp.sum(out_ps)
    return jnp.maximum(jnp.float32(0.0), jnp.float32(0.2) - 2.0 * sum_abs / sum_ps)


def _reference(pred, ref):
    l1 = jnp.mean(jnp.abs(pred - ref))
    m = jnp.mean(pred + ref)
    return jnp.maximum(0.0, 0.2 - l1 * 2.0 / m)


if __name__ == "__main__":
    key = jax.random.PRNGKey(0)
    k1, k2, k3 = jax.random.split(key, 3)

    # Small NCHW inputs (batch=2, channels=4, spatial=16x16) -> single-block path.
    pred = jax.random.uniform(k1, (2, 4, 16, 16), dtype=jnp.float32)
    ref = jax.random.uniform(k2, (2, 4, 16, 16), dtype=jnp.float32)
    got = jax.block_until_ready(diversity_loss(pred, ref))
    want = jax.block_until_ready(_reference(pred, ref))
    assert jnp.allclose(got, want, atol=1e-5, rtol=1e-5), (got, want)

    # Near-identical inputs exercise the nonzero (unclamped) branch.
    ref_close = pred + 0.01 * jax.random.normal(k3, pred.shape, dtype=jnp.float32)
    got = jax.block_until_ready(diversity_loss(pred, ref_close))
    want = jax.block_until_ready(_reference(pred, ref_close))
    assert jnp.allclose(got, want, atol=1e-5, rtol=1e-5), (got, want)

    # bf16 inputs stay bf16 in HBM; cast to f32 happens inside the kernel.
    pred_bf = pred.astype(jnp.bfloat16)
    ref_bf = ref_close.astype(jnp.bfloat16)
    got = jax.block_until_ready(diversity_loss(pred_bf, ref_bf))
    want = jax.block_until_ready(_reference(pred_bf.astype(jnp.float32),
                                            ref_bf.astype(jnp.float32)))
    assert jnp.allclose(got, want, atol=1e-3, rtol=1e-3), (got, want)

    # Larger input exercises the 2-way-split streaming path with a ragged tail
    # (9216 rows -> 5 data blocks on a (2, 3) grid; tail + clamped blocks masked).
    pred_big = jax.random.uniform(k1, (8, 16, 96, 96), dtype=jnp.float32)
    ref_big = pred_big + 0.01 * jax.random.uniform(k2, pred_big.shape, dtype=jnp.float32)
    got = jax.block_until_ready(diversity_loss(pred_big, ref_big))
    want = jax.block_until_ready(_reference(pred_big, ref_big))
    assert jnp.allclose(got, want, atol=1e-4, rtol=1e-4), (got, want)

    print("KERNEL_OK")
</pallas_src>

<mosaic_0001>
module attributes {stable_mosaic.version = 11 : i64} {
  func.func @_small_kernel(%arg0: memref<16x128xf32, #tpu.memory_space<vmem>>, %arg1: memref<16x128xf32, #tpu.memory_space<vmem>>, %arg2: memref<1x1xf32, #tpu.memory_space<smem>>) attributes {dimension_semantics = [], scalar_prefetch = 0 : i64, scratch_operands = 0 : i64, tpu.core_type = #tpu.core_type<tc>} {
    %c0 = arith.constant 0 : index
    %c0_0 = arith.constant 0 : index
    %0 = vector.load %arg0[%c0, %c0_0] : memref<16x128xf32, #tpu.memory_space<vmem>>, vector<16x128xf32>
    %c0_1 = arith.constant 0 : index
    %c0_2 = arith.constant 0 : index
    %1 = vector.load %arg1[%c0_1, %c0_2] : memref<16x128xf32, #tpu.memory_space<vmem>>, vector<16x128xf32>
    %2 = arith.subf %0, %1 : vector<16x128xf32>
    %3 = math.absf %2 : vector<16x128xf32>
    %4 = vector.shape_cast %3 : vector<16x128xf32> to vector<1x16x128xf32>
    %cst = arith.constant dense<0.000000e+00> : vector<1xf32>
    %5 = vector.multi_reduction <add>, %4, %cst [1, 2] : vector<1x16x128xf32> to vector<1xf32>
    %6 = vector.shape_cast %5 : vector<1xf32> to vector<1x1x1xf32>
    %7 = vector.extract %6[0, 0, 0] : f32 from vector<1x1x1xf32>
    %8 = arith.addf %0, %1 : vector<16x128xf32>
    %9 = vector.shape_cast %8 : vector<16x128xf32> to vector<1x16x128xf32>
    %cst_3 = arith.constant dense<0.000000e+00> : vector<1xf32>
    %10 = vector.multi_reduction <add>, %9, %cst_3 [1, 2] : vector<1x16x128xf32> to vector<1xf32>
    %11 = vector.shape_cast %10 : vector<1xf32> to vector<1x1x1xf32>
    %12 = vector.extract %11[0, 0, 0] : f32 from vector<1x1x1xf32>
    %cst_4 = arith.constant 2.000000e+00 : f32
    %13 = arith.mulf %cst_4, %7 : f32
    %14 = arith.divf %13, %12 : f32
    %cst_5 = arith.constant 2.000000e-01 : f32
    %15 = arith.subf %cst_5, %14 : f32
    %cst_6 = arith.constant 0.000000e+00 : f32
    %16 = arith.maximumf %cst_6, %15 : f32
    %c0_7 = arith.constant 0 : index
    %c0_8 = arith.constant 0 : index
    %17 = memref.load %arg2[%c0_7, %c0_8] : memref<1x1xf32, #tpu.memory_space<smem>>
    memref.store %16, %arg2[%c0_7, %c0_8] : memref<1x1xf32, #tpu.memory_space<smem>>
    return
  }
}

</mosaic_0001>

<bundles_post_ra>
// kernel: diversity_loss.1
= control target key start
LH: loop header
LB: loop body
LE: loop exit
PB: predicated region body
PF: predicated region fallthrough
CT: control target
= control target key end

     0   :  { %s127_s0 = inlined_call_operand.vmem [shape: f32[16,128], index: 0, kind: input, shape index: {}]   ;;  %s128_s1 = inlined_call_operand.vmem [shape: f32[16,128], index: 1, kind: input, shape index: {}]   ;;  %s129_s2 = inlined_call_operand.hbm [shape: f32[1,1], index: 2, kind: output, shape index: {}]  }
   0x1   :  { %v12_v0 = vld [vmem:[%s127_s0] sm:$0xff]  ;;  %v13_v1 = vld [vmem:[%s127_s0 + $0x8] sm:$0xff] }
   0x2   :  { %v14_v2 = vld [vmem:[%s128_s1] sm:$0xff]  ;;  %v15_v3 = vld [vmem:[%s128_s1 + $0x8] sm:$0xff] }
   0x3   :  { %v16_v4 = vsub.f32 %v12_v0, %v14_v2 }
   0x4   :  { %7 = vsyncpa [#allocation3], 0  ;;  %v17_v5 = vsub.f32 %v13_v1, %v15_v3  ;;  %v30_v8 = vadd.f32 %v14_v2, %v12_v0  ;;  %v31_v9 = vadd.f32 %v15_v3, %v13_v1  ;;  %s86_s21 = smov 0.0   ;;  %s74_s25 = scalar_lea.hbm %s129_s2, 16 }
   0x5   :  { %v18_v6 = vand.u32 2147483647, %v16_v4  ;;  %p75_p0 = scmp.ne.s32.totalorder %s129_s2, %s74_s25  ;;  %p78_p1 = scmp.lt.u32.totalorder %s74_s25, %s129_s2 }
   0x6   :  { %v19_v7 = vand.u32 2147483647, %v17_v5  ;;  %v32_v11 = vadd.f32 %v31_v9, %v30_v8 }
   0x7   :  { %p80_p2 = pnand %p78_p1, %p75_p0 }
   0x8   :  { %v20_v10 = vadd.f32 %v19_v7, %v18_v6 }
   0xa   :  { %21 = vadd.xlane.f32.xlu0 %v20_v10 }
   0xe   :  { %33 = vadd.xlane.f32.xlu0 %v32_v11 }
  0x97   :  { %v22_v12 = vpop.xlane.xlu0 %21 }
  0x98   :  { %v23_v13 = vrot.slane %v22_v12, 4 }
  0x9a   :  { %v24_v14 = vadd.f32 %v23_v13, %v22_v12 }
  0x9b   :  { %v34_v15 = vpop.xlane.xlu0 %33 }
  0x9c   :  { %v25_v16 = vrot.slane %v24_v14, 2  ;;  %v35_v17 = vrot.slane %v34_v15, 4 }
  0x9e   :  { %v36_v18 = vadd.f32 %v35_v17, %v34_v15  ;;  %v26_v19 = vadd.f32 %v25_v16, %v24_v14 }
  0xa0   :  { %v37_v20 = vrot.slane %v36_v18, 2  ;;  %v27_v21 = vrot.slane %v26_v19, 1 }
  0xa2   :  { %v38_v22 = vadd.f32 %v37_v20, %v36_v18  ;;  %v28_v23 = vadd.f32 %v27_v21, %v26_v19 }
  0xa4   :  { %64 = vpush %v28_v23  ;;  %v39_v24 = vrot.slane %v38_v22, 1 }
  0xa6   :  { %v40_v25 = vadd.f32 %v39_v24, %v38_v22 }
  0xa8   :  { %66 = vpush %v40_v25 }
  0xd5   :  { %s65_s0 = spop %64 }
  0xd6   :  { %s42_s17 = smul.f32 2.0, %s65_s0 }
  0xd9   :  { %s67_s1 = spop %66 }
  0xda   :  { %v43_v26 = vstv %s67_s1 }
  0xdb   :  { %72 = vrcp.f32 %v43_v26 }
  0xe5   :  { %v73_v27 = vpop.eup %72 }
  0xe6   :  { %68 = vpush %v73_v27 }
 0x117   :  { %s69_s18 = spop %68 }
 0x118   :  { %s46_s19 = smul.f32 %s69_s18, %s42_s17 }
 0x11a   :  { %s47_s20 = ssub.f32 0.2, %s46_s19 }
 0x11c   :  { %s48_s22 = smax.f32 %s86_s21, %s47_s20 }
 0x11d   :  { %50 = sst [smem:[#allocation2]] %s48_s22 }
 0x11e   :  { %83 = shalt.err (!%p80_p2)
}
 0x11f   :  { %s87_s30 = smov [#allocation2]  }
 0x120   :  { %58 = dma.smem_to_hbm %s87_s30, 16, %s129_s2, [#allocation3]  }
 0x121   :  { %84 = dma.done.wait [#allocation3], 16  }
 0x122   :  { %85 = vsyncadd [#allocation3], 4294967280 }
 0x123   :  { %62 = sfence }
 0x124   :  { %63 = vsyncpa [#allocation3], 1 }

</bundles_post_ra>
